<compile_context>
chip_gen: v5e
topology: v5e:2x2
jax: 0.10.0
libtpu: 0.0.40
codegen_flags: <defaults>
</compile_context>

<pallas_src>
import jax
import jax.numpy as jnp
from jax.experimental import pallas as pl
from jax.experimental.pallas import tpu as pltpu

_LANE = 128
_VMEM_BUDGET = 32 * 1024 * 1024   # conservative scoped-VMEM budget across v5e/v6e/v7x


def _round_up(x, m):
    return -(-x // m) * m


# ----------------------- Path 1: lane-aligned flat (M, 128) -----------------------

def _make_flat_kernel(tile_rows, lane, valid_rows, needs_mask):
    def kernel(p_ref, t_ref, o_ref):
        p = p_ref[...].astype(jnp.float32)
        t = t_ref[...].astype(jnp.float32)
        # One log instead of two: log(p) - log(t) == log(p / t).
        # NOTE: for extreme magnitude ratios p/t can under/overflow where
        # log(p) - log(t) would stay finite; fine for strictly-positive STFT mags.
        diff = jnp.abs(jnp.log(p / t))
        if needs_mask:
            row = (jax.lax.broadcasted_iota(jnp.int32, (tile_rows, lane), 0)
                   + pl.program_id(0) * tile_rows)
            # Select masks out garbage from the padded boundary block (NaN/inf in
            # the unselected branch does not propagate through a select).
            diff = jnp.where(row < valid_rows, diff, 0.0)
        # Sublane fold -> (8, lane) per-tile partial (pure VPU vreg adds).
        o_ref[...] = diff.reshape(-1, 8, lane).sum(axis=0)
    return kernel


def _flat_abs_log_sum(p2d, t2d, tile_rows_req):
    m_rows, lane = p2d.shape
    itemsize = jnp.dtype(p2d.dtype).itemsize
    row_align = max(8, 32 // itemsize)          # 8 rows f32, 16 bf16, 32 for 8-bit

    tile_rows = min(tile_rows_req, _round_up(m_rows, row_align))
    # Keep >= ~4 grid steps when there is enough work (v7x megacore sharding).
    if m_rows >= 4 * row_align:
        tile_rows = min(tile_rows, _round_up(-(-m_rows // 4), row_align))
    tile_rows = max(row_align, _round_up(tile_rows, row_align))

    def est(tr):  # 2 inputs x 2 buffers + f32 working set + slack
        return 4 * tr * lane * itemsize + 3 * tr * lane * 4 + (1 << 20)

    while tile_rows > row_align and est(tile_rows) > _VMEM_BUDGET:
        tile_rows = max(row_align, _round_up(tile_rows // 2, row_align))

    num_tiles = -(-m_rows // tile_rows)
    needs_mask = (m_rows % tile_rows) != 0
    kernel = _make_flat_kernel(tile_rows, lane, m_rows, needs_mask)

    partials = pl.pallas_call(
        kernel,
        out_shape=jax.ShapeDtypeStruct((num_tiles * 8, lane), jnp.float32),
        grid_spec=pltpu.PrefetchScalarGridSpec(
            num_scalar_prefetch=0,
            grid=(num_tiles,),
            in_specs=[
                pl.BlockSpec((tile_rows, lane), lambda i: (i, 0)),
                pl.BlockSpec((tile_rows, lane), lambda i: (i, 0)),
            ],
            out_specs=pl.BlockSpec((8, lane), lambda i: (i, 0)),
        ),
        compiler_params=pltpu.CompilerParams(
            dimension_semantics=("parallel",),
            vmem_limit_bytes=int(min(max(est(tile_rows), 16 << 20), 48 << 20)),
        ),
    )(p2d, t2d)
    return jnp.sum(partials)


# ------------- Path 2: ragged sizes, full trailing dims, tile the lead dim --------

def _make_slab_kernel(tile_l, d2, d3, valid_l, needs_mask):
    def kernel(p_ref, t_ref, o_ref):
        p = p_ref[...].astype(jnp.float32)
        t = t_ref[...].astype(jnp.float32)
        diff = jnp.abs(jnp.log(p / t))
        if needs_mask:
            idx = (jax.lax.broadcasted_iota(jnp.int32, (tile_l, d2, d3), 0)
                   + pl.program_id(0) * tile_l)
            diff = jnp.where(idx < valid_l, diff, 0.0)
        partial = diff.sum(axis=0).sum(axis=0)          # -> (d3,) lane vector
        o_ref[...] = partial.reshape(1, 1, d3)
    return kernel


def _slab_abs_log_sum(p3, t3):
    lead, d2, d3 = p3.shape
    itemsize = jnp.dtype(p3.dtype).itemsize
    pad_elems = _round_up(d2, 8) * _round_up(d3, _LANE)   # VMEM layout footprint
    slab_in = pad_elems * itemsize
    slab_f32 = pad_elems * 4

    def est(tl):
        return 4 * tl * slab_in + 3 * tl * slab_f32 + (1 << 20)

    target_tile_bytes = 2 << 20
    tile_l = max(1, min(lead, target_tile_bytes // max(slab_in, 1)))
    if lead >= 4:                       # keep >= ~4 grid steps for v7x megacore
        tile_l = min(tile_l, -(-lead // 4))
    while tile_l > 1 and est(tile_l) > _VMEM_BUDGET:
        tile_l = max(1, tile_l // 2)

    num_tiles = -(-lead // tile_l)
    needs_mask = (lead % tile_l) != 0
    kernel = _make_slab_kernel(tile_l, d2, d3, lead, needs_mask)

    partials = pl.pallas_call(
        kernel,
        out_shape=jax.ShapeDtypeStruct((num_tiles, 1, d3), jnp.float32),
        grid_spec=pltpu.PrefetchScalarGridSpec(
            num_scalar_prefetch=0,
            grid=(num_tiles,),
            in_specs=[
                pl.BlockSpec((tile_l, d2, d3), lambda i: (i, 0, 0)),
                pl.BlockSpec((tile_l, d2, d3), lambda i: (i, 0, 0)),
            ],
            out_specs=pl.BlockSpec((1, 1, d3), lambda i: (i, 0, 0)),
        ),
        compiler_params=pltpu.CompilerParams(
            dimension_semantics=("parallel",),
            vmem_limit_bytes=int(min(max(est(tile_l), 16 << 20), 48 << 20)),
        ),
    )(p3, t3)
    return jnp.sum(partials)


# ------------------------------------ wrapper -------------------------------------

def log_stft_magnitude_loss(predicts_mag, targets_mag, *, tile_rows=8192):
    """Pallas implementation of LogSTFTMagnitude.forward (mean L1 of logs)."""
    assert predicts_mag.shape == targets_mag.shape
    assert predicts_mag.dtype == targets_mag.dtype
    n_elems = predicts_mag.size
    shape = predicts_mag.shape

    if n_elems % _LANE == 0:
        # Free reshape to lane-dense (M, 128) slabs; no padding copy.
        m_rows = n_elems // _LANE
        total = _flat_abs_log_sum(predicts_mag.reshape(m_rows, _LANE),
                                  targets_mag.reshape(m_rows, _LANE),
                                  tile_rows)
    else:
        # Ragged total size: keep trailing two dims intact (full-extent block dims,
        # so no reshape/pad copy) and tile the flattened leading dim.
        if predicts_mag.ndim >= 3:
            lead = 1
            for d in shape[:-2]:
                lead *= d
            shape3 = (lead, shape[-2], shape[-1])
        elif predicts_mag.ndim == 2:
            shape3 = (1, shape[0], shape[1])
        else:
            shape3 = (1, 1, shape[0])

        itemsize = jnp.dtype(predicts_mag.dtype).itemsize
        pad_elems = _round_up(shape3[1], 8) * _round_up(shape3[2], _LANE)
        single_slab_est = 4 * pad_elems * itemsize + 3 * pad_elems * 4 + (1 << 20)

        if single_slab_est <= _VMEM_BUDGET:
            total = _slab_abs_log_sum(predicts_mag.reshape(shape3),
                                      targets_mag.reshape(shape3))
        else:
            # Rare fallback: a single trailing slab exceeds the VMEM budget and the
            # total size is not lane-aligned.  Pad with 1.0 (log(1) == 0) to a
            # multiple of 128 (costs one extra copy) and use the flat path.
            pad = _round_up(n_elems, _LANE) - n_elems
            ones = jnp.ones((pad,), predicts_mag.dtype)
            p_flat = jnp.concatenate([predicts_mag.reshape(-1), ones])
            t_flat = jnp.concatenate([targets_mag.reshape(-1), ones])
            m_rows = p_flat.size // _LANE
            total = _flat_abs_log_sum(p_flat.reshape(m_rows, _LANE),
                                      t_flat.reshape(m_rows, _LANE),
                                      tile_rows)

    # reduction='mean' over the true element count.
    return total / jnp.float32(n_elems)


def _reference(predicts_mag, targets_mag):
    return jnp.mean(jnp.abs(jnp.log(predicts_mag) - jnp.log(targets_mag)))


if __name__ == "__main__":
    key = jax.random.PRNGKey(0)
    keys = jax.random.split(key, 8)

    # Magnitudes must be strictly positive for log().
    def _check(shape, kp, kt):
        p = jax.random.uniform(kp, shape, jnp.float32, minval=0.1, maxval=2.0)
        t = jax.random.uniform(kt, shape, jnp.float32, minval=0.1, maxval=2.0)
        loss = jax.block_until_ready(log_stft_magnitude_loss(p, t))
        ref = _reference(p, t)
        assert jnp.allclose(loss, ref, rtol=1e-5, atol=1e-6), (shape, loss, ref)

    # Lane-aligned path: batch=2, freq_bins=8, frames=128.
    _check((2, 8, 128), keys[0], keys[1])
    # Lane-aligned with a partial boundary block (exercises in-kernel row mask).
    _check((3, 5, 128), keys[2], keys[3])
    # Non-lane-aligned: full-trailing-dims slab path, no padding copy.
    _check((2, 9, 100), keys[4], keys[5])
    # Non-lane-aligned, multi-tile grid with a masked boundary slab.
    _check((5, 9, 100), keys[6], keys[7])

    print("KERNEL_OK")
</pallas_src>

<mosaic_0001>
module attributes {stable_mosaic.version = 11 : i64} {
  func.func @kernel(%arg0: i32, %arg1: memref<16x128xf32, #tpu.memory_space<vmem>>, %arg2: memref<16x128xf32, #tpu.memory_space<vmem>>, %arg3: memref<8x128xf32, #tpu.memory_space<vmem>>) attributes {dimension_semantics = [#tpu.dimension_semantics<parallel>], iteration_bounds = array<i64: 1>, scalar_prefetch = 0 : i64, scratch_operands = 0 : i64, tpu.core_type = #tpu.core_type<tc>, window_params = [{transform_indices = @transform_0, window_bounds = array<i64: 16, 128>}, {transform_indices = @transform_1, window_bounds = array<i64: 16, 128>}, {transform_indices = @transform_2, window_bounds = array<i64: 8, 128>}]} {
    %c0 = arith.constant 0 : index
    %c0_0 = arith.constant 0 : index
    %0 = vector.load %arg1[%c0, %c0_0] : memref<16x128xf32, #tpu.memory_space<vmem>>, vector<16x128xf32>
    %c0_1 = arith.constant 0 : index
    %c0_2 = arith.constant 0 : index
    %1 = vector.load %arg2[%c0_1, %c0_2] : memref<16x128xf32, #tpu.memory_space<vmem>>, vector<16x128xf32>
    %2 = arith.divf %0, %1 : vector<16x128xf32>
    %3 = math.log %2 : vector<16x128xf32>
    %4 = math.absf %3 : vector<16x128xf32>
    %5 = vector.shape_cast %4 : vector<16x128xf32> to vector<2x8x128xf32>
    %cst = arith.constant dense<0.000000e+00> : vector<8x128xf32>
    %6 = vector.multi_reduction <add>, %5, %cst [0] : vector<2x8x128xf32> to vector<8x128xf32>
    %c0_3 = arith.constant 0 : index
    %c0_4 = arith.constant 0 : index
    %7 = vector.load %arg3[%c0_3, %c0_4] : memref<8x128xf32, #tpu.memory_space<vmem>>, vector<8x128xf32>
    tpu.vector_store %arg3[%c0_3, %c0_4], %6 {strides = array<i32>} : memref<8x128xf32, #tpu.memory_space<vmem>>, vector<8x128xf32>,
    return
  }
  func.func @transform_0(%arg0: i32) -> (i32, i32) {
    %c0_i32 = arith.constant 0 : i32
    %c0_i32_0 = arith.constant 0 : i32
    return %arg0, %c0_i32 : i32, i32
  }
  func.func @transform_1(%arg0: i32) -> (i32, i32) {
    %c0_i32 = arith.constant 0 : i32
    %c0_i32_0 = arith.constant 0 : i32
    return %arg0, %c0_i32 : i32, i32
  }
  func.func @transform_2(%arg0: i32) -> (i32, i32) {
    %c0_i32 = arith.constant 0 : i32
    %c0_i32_0 = arith.constant 0 : i32
    return %arg0, %c0_i32 : i32, i32
  }
}

</mosaic_0001>

<bundles_post_ra>
// kernel: tpu_custom_call.1
= control target key start
LH: loop header
LB: loop body
LE: loop exit
PB: predicated region body
PF: predicated region fallthrough
CT: control target
= control target key end

     0   :  { %7 = vsyncpa [#allocation3], 0  ;;  %s224_s0 = inlined_call_operand.hbm [shape: f32[16,128], index: 0, kind: input, shape index: {}]   ;;  %s225_s1 = inlined_call_operand.hbm [shape: f32[16,128], index: 1, kind: input, shape index: {}]   ;;  %s226_s2 = inlined_call_operand.hbm [shape: f32[8,128], index: 2, kind: output, shape index: {}]  }
   0x1   :  { %8 = vsyncpa [#allocation6], 0 }
   0x2   :  { %9 = vsyncpa [#allocation4], 0  ;;  %s14_s11 = sshll.u32 %s224_s0, 4  ;;  %s195_s12 = smov [#allocation2]   ;;  %s15_s11 = int_to_ptr.hbm [resolvable:$true] %s14_s11 }
   0x3   :  { %s16_s13 = sshll.u32 %s195_s12, 4  ;;  %s27_s16 = sshll.u32 %s225_s1, 4  ;;  %s17_s13 = int_to_ptr.vmem [resolvable:$true] %s16_s13  ;;  %s28_s16 = int_to_ptr.hbm [resolvable:$true] %s27_s16 }
   0x4   :  { %s196_s17 = smov 128   ;;  %s197_s18 = smov 8  }
   0x5   :  { %22 = dma.hbm_to_vmem [thread:$0]  %s15_s11, 256, %s17_s13, [#allocation3], %s196_s17, %s196_s17, %s197_s18  }
   0x6   :  { %s198_s19 = smov [#allocation5]  }
   0x7   :  { %s29_s20 = sshll.u32 %s198_s19, 4  ;;  %s30_s20 = int_to_ptr.vmem [resolvable:$true] %s29_s20 }
   0x8   :  { %35 = dma.hbm_to_vmem [thread:$0]  %s28_s16, 256, %s30_s20, [#allocation6], %s196_s17, %s196_s17, %s197_s18  }
   0x9   :  { %189 = dma.done.wait [#allocation3], 256  }
   0xa   :  { %190 = vsyncadd [#allocation3], 4294967040 }
   0xb   :  { %191 = dma.done.wait [#allocation6], 256  }
   0xc   :  { %192 = vsyncadd [#allocation6], 4294967040  ;;  %v46_v0 = vld [vmem:[#allocation5] sm:$0xff]  ;;  %v47_v1 = vld [vmem:[#allocation5 + $0x8] sm:$0xff]  ;;  %s199_s0 = smov [#allocation7]   ;;  %s93_s23 = sshll.u32 %s226_s2, 4  ;;  %s94_s23 = int_to_ptr.hbm [resolvable:$true] %s93_s23 }
   0xd   :  { %109 = vrcp.f32 %v46_v0  ;;  %vm53_vm0 = vweird.f32 %v46_v0  ;;  %v59_v5 = vand.u32 2147483648, %v46_v0  ;;  %v57_v8 = vand.u32 2147483647, %v46_v0  ;;  %v44_v17 = vld [vmem:[#allocation2] sm:$0xff]  ;;  %v45_v19 = vld [vmem:[#allocation2 + $0x8] sm:$0xff]  ;;  %s91_s1 = sshll.u32 %s199_s0, 4  ;;  %s92_s1 = int_to_ptr.vmem [resolvable:$true] %s91_s1 }
   0xe   :  { %111 = vrcp.f32 %v47_v1  ;;  %v74_v9 = vand.u32 2147483648, %v47_v1  ;;  %vm68_vm2 = vweird.f32 %v47_v1  ;;  %v72_v11 = vand.u32 2147483647, %v47_v1 }
   0xf   :  { %v60_v13 = vor.u32 1.1754944e-38, %v59_v5  ;;  %vm58_vm5 = vcmp.eq.f32.partialorder %v57_v8, 8.507059e+37 }
  0x10   :  { %v75_v16 = vor.u32 1.1754944e-38, %v74_v9  ;;  %vm73_vm7 = vcmp.eq.f32.partialorder %v72_v11, 8.507059e+37 }
  0x13   :  { %v110_v2 = vpop.eup %109 }
  0x14   :  { %v112_v3 = vpop.eup %111  ;;  %v49_v4 = vmul.f32 %v110_v2, %v46_v0  ;;  %vm54_vm1 = vweird.f32 %v110_v2 }
  0x15   :  { %v64_v6 = vmul.f32 %v112_v3, %v47_v1  ;;  %vm69_vm3 = vweird.f32 %v112_v3  ;;  %vm55_vm4 = vmor %vm53_vm0, %vm54_vm1 }
  0x16   :  { %v50_v7 = vsub.f32 1.0, %v49_v4  ;;  %vm70_vm6 = vmor %vm68_vm2, %vm69_vm3 }
  0x17   :  { %v65_v10 = vsub.f32 1.0, %v64_v6 }
  0x18   :  { %v51_v12 = vmul.f32 %v110_v2, %v50_v7 }
  0x19   :  { %v66_v14 = vmul.f32 %v112_v3, %v65_v10 }
  0x1a   :  { %v52_v15 = vadd.f32 %v110_v2, %v51_v12 }
  0x1b   :  { %v67_v18 = vadd.f32 %v112_v3, %v66_v14 }
  0x1c   :  { %v56_v20 = vsel %vm55_vm4, %v110_v2, %v52_v15 }
  0x1d   :  { %v61_v21 = vsel %vm58_vm5, %v60_v13, %v56_v20  ;;  %v71_v22 = vsel %vm70_vm6, %v112_v3, %v67_v18 }
  0x1e   :  { %v62_v23 = vmul.f32 %v61_v21, %v44_v17  ;;  %v76_v24 = vsel %vm73_vm7, %v75_v16, %v71_v22 }
  0x1f   :  { %v77_v25 = vmul.f32 %v76_v24, %v45_v19 }
  0x20   :  { %113 = vlog2.f32 %v62_v23 }
  0x21   :  { %115 = vlog2.f32 %v77_v25 }
  0x26   :  { %v114_v26 = vpop.eup %113 }
  0x27   :  { %v116_v27 = vpop.eup %115  ;;  %v79_v28 = vmul.f32 0.6931472, %v114_v26 }
  0x28   :  { %v81_v29 = vmul.f32 0.6931472, %v116_v27 }
  0x29   :  { %v82_v30 = vand.u32 2147483647, %v79_v28 }
  0x2a   :  { %v83_v31 = vand.u32 2147483647, %v81_v29 }
  0x2c   :  { %v84_v32 = vadd.f32 %v83_v31, %v82_v30 }
  0x2e   :  { %85 = vst [vmem:[#allocation7] sm:$0xff] %v84_v32 }
  0x2f   :  { %96 = dma.vmem_to_hbm [thread:$0]  %s92_s1, 128, %s94_s23, [#allocation4]  }
  0x30   :  { %193 = dma.done.wait [#allocation4], 128  }
  0x31   :  { %194 = vsyncadd [#allocation4], 4294967168 }
  0x32   :  { %101 = vsyncpa [#allocation3], 1 }
  0x33   :  { %102 = vsyncpa [#allocation6], 1 }
  0x34   :  { %103 = vsyncpa [#allocation4], 1 }

</bundles_post_ra>
